<compile_context>
chip_gen: v7x
topology: tpu7x:2x2x1
jax: 0.10.0
libtpu: 0.0.40
codegen_flags: <defaults>
</compile_context>

<pallas_src>
import functools

import jax
import jax.numpy as jnp
from jax.experimental import pallas as pl
from jax.experimental.pallas import tpu as pltpu


def _round_up(x, m):
    return ((x + m - 1) // m) * m


# ---------------------------------------------------------------------------
# Kernel
# ---------------------------------------------------------------------------
def _vae_kernel(n_mlp, n_clusters, i_pad, i_size, x_ref, *refs):
    """One batch tile of VAE.forward (model_type='selector').

    refs layout (all VMEM):
      fused MLP : [W0, b0, ..., W_{n_mlp-1}, b_{n_mlp-1}]  (W bf16, b f32)
                  layer 0 column-concats encoder|cluster, layers >=1 are
                  block-diagonal -> one matmul drives both towers.
      heads     : W_heads (K, 2H, 3*I_pad) bf16, b_heads (K, 1, 3*I_pad) f32
                  per-cluster columns: [0:Ip]=enc means, [Ip:2Ip]=enc log_var,
                  [2Ip:3Ip]=cluster means (columns zero-padded I -> I_pad).
      outputs   : mu_c (tb, I_pad) f32, std_c (tb, I_pad) f32,
                  clusters (K, tb, I) f32 (unpadded lanes, single store each).
    """
    n_w = 2 * n_mlp + 2
    w_refs = refs[:n_w]
    mu_ref, std_ref, cl_ref = refs[n_w:]

    Ip = i_pad

    # ---- fused encoder + cluster MLP (single matmul per layer) ----
    h = x_ref[...]                                           # bf16 (tb, D)
    for l in range(n_mlp):
        w = w_refs[2 * l][...]
        b = w_refs[2 * l + 1][...]
        h = jnp.tanh(jnp.dot(h, w, preferred_element_type=jnp.float32) + b)
        h = h.astype(jnp.bfloat16)                           # (tb, 2*H_l)

    w_heads = w_refs[2 * n_mlp]                              # (K, 2H, 3*Ip) bf16
    b_heads = w_refs[2 * n_mlp + 1]                          # (K, 1, 3*Ip) f32

    # ---- per-cluster heads + online softmax-weighted selector reduction ----
    # softmax is per-lane across k; mu/std are folded in streaming so no
    # (tb, K*I_pad) mu_phi/std_phi temporaries exist.  Only the cl_k logits
    # stay live so clusters can be written with a single normalized store.
    cl_list = []
    m = denom = mu_acc = std_acc = None
    for k in range(n_clusters):
        head = jnp.dot(h, w_heads[k], preferred_element_type=jnp.float32)
        head = head + b_heads[k]                             # (tb, 3*Ip) f32
        mu_k = head[:, 0:Ip]
        std_k = jnp.exp(0.5 * head[:, Ip:2 * Ip])
        cl_k = head[:, 2 * Ip:3 * Ip]
        cl_list.append(cl_k)
        if k == 0:
            m = cl_k
            denom = jnp.ones_like(cl_k)
            mu_acc = mu_k
            std_acc = std_k
        else:
            m_new = jnp.maximum(m, cl_k)
            alpha = jnp.exp(m - m_new)
            e_k = jnp.exp(cl_k - m_new)
            denom = alpha * denom + e_k
            mu_acc = alpha * mu_acc + e_k * mu_k
            std_acc = alpha * std_acc + e_k * std_k
            m = m_new

    # approx reciprocal runs on the EUP slot; rel err ~2^-12 (inside tolerance).
    inv = pl.reciprocal(denom, approx=True)
    mu_ref[...] = mu_acc * inv
    std_ref[...] = std_acc * inv
    # single normalized store per cluster (exp recomputed on the idle EUP slot).
    for k in range(n_clusters):
        sm_k = jnp.exp(cl_list[k] - m) * inv                 # (tb, Ip)
        cl_ref[k, :, :] = sm_k[:, :i_size]
    # TODO(synk): model_type='gmm' (3-D mu/std passthrough) and is_multimodal
    # (EncoderCNN) branches are not wired through; only the 'selector' path.


# ---------------------------------------------------------------------------
# Parameter init (matches torch: kaiming_normal_ weights, zero biases)
# ---------------------------------------------------------------------------
def _init_linear(key, in_f, out_f):
    std = (2.0 / in_f) ** 0.5
    w = std * jax.random.normal(key, (in_f, out_f), dtype=jnp.float32)
    b = jnp.zeros((1, out_f), dtype=jnp.float32)
    return w, b


# ---------------------------------------------------------------------------
# Wrapper
# ---------------------------------------------------------------------------
class PallasVAE:
    def __init__(self, encoder_layer_sizes, latent_size, n_clusters, batch_size,
                 model_type='selector', is_multimodal=False, seed=0):
        assert isinstance(encoder_layer_sizes, list)
        assert isinstance(latent_size, int)
        assert latent_size % n_clusters == 0
        assert len(encoder_layer_sizes) >= 2
        if model_type != 'selector' or is_multimodal:
            raise NotImplementedError(
                "Only model_type='selector', is_multimodal=False is implemented.")

        self.latent_size = latent_size
        self.n_clusters = n_clusters
        self.input_size = latent_size // n_clusters
        self.i_pad = _round_up(self.input_size, 128)
        self.batch_size = batch_size
        self.model_type = model_type
        self.layer_sizes = list(encoder_layer_sizes)
        self.n_mlp = len(encoder_layer_sizes) - 1
        self.in_dim = encoder_layer_sizes[0]

        # ---- reference (torch-layout) parameters, f32, unpadded ----
        key = jax.random.PRNGKey(seed)
        params = []
        for in_s, out_s in zip(encoder_layer_sizes[:-1], encoder_layer_sizes[1:]):
            key, k = jax.random.split(key)
            params += list(_init_linear(k, in_s, out_s))
        key, k = jax.random.split(key)
        params += list(_init_linear(k, encoder_layer_sizes[-1], latent_size))  # enc means
        key, k = jax.random.split(key)
        params += list(_init_linear(k, encoder_layer_sizes[-1], latent_size))  # enc log_var
        for in_s, out_s in zip(encoder_layer_sizes[:-1], encoder_layer_sizes[1:]):
            key, k = jax.random.split(key)
            params += list(_init_linear(k, in_s, out_s))
        key, k = jax.random.split(key)
        params += list(_init_linear(k, encoder_layer_sizes[-1], latent_size))  # clu means
        self.params = params

        # ---- kernel-side fused / padded parameters (few arrays, few DMAs) ----
        self.kernel_params = self._pack_kernel_params(params)

        # per-generation hardware info (tile / vmem decisions)
        try:
            self._vmem_cap = int(pltpu.get_tpu_info().vmem_capacity_bytes)
        except Exception:
            self._vmem_cap = 64 * 2 ** 20   # conservative (v7x-class) fallback

        self._forward_cache = {}            # batch size -> jitted forward

    # -- parameter packing -------------------------------------------------
    def _pack_kernel_params(self, params):
        K, I, Ip = self.n_clusters, self.input_size, self.i_pad
        n_mlp = self.n_mlp
        H = self.layer_sizes[-1]

        idx = 0
        enc_mlp = []
        for _ in range(n_mlp):
            enc_mlp.append((params[idx], params[idx + 1])); idx += 2
        wm, bm = params[idx], params[idx + 1]; idx += 2
        wv, bv = params[idx], params[idx + 1]; idx += 2
        clu_mlp = []
        for _ in range(n_mlp):
            clu_mlp.append((params[idx], params[idx + 1])); idx += 2
        wmc, bmc = params[idx], params[idx + 1]; idx += 2

        kparams = []
        # fused MLP: layer 0 concatenates columns (shared input x); deeper layers
        # are block-diagonal so a single matmul drives both towers.
        for l in range(n_mlp):
            we, be = enc_mlp[l]
            wc, bc = clu_mlp[l]
            if l == 0:
                wf = jnp.concatenate([we, wc], axis=1)
            else:
                ie, oe = we.shape
                ic, oc = wc.shape
                wf = jnp.zeros((ie + ic, oe + oc), jnp.float32)
                wf = wf.at[:ie, :oe].set(we)
                wf = wf.at[ie:, oe:].set(wc)
            bf = jnp.concatenate([be, bc], axis=1)
            kparams.append(wf.astype(jnp.bfloat16))
            kparams.append(bf)                               # f32 bias
        # per-cluster fused heads, columns zero-padded I -> I_pad (128-aligned):
        #   cols [0:Ip]    = encoder means   (rows [0:H])
        #   cols [Ip:2Ip]  = encoder log_var (rows [0:H])
        #   cols [2Ip:3Ip] = cluster means   (rows [H:2H])
        w_heads = jnp.zeros((K, 2 * H, 3 * Ip), jnp.float32)
        b_heads = jnp.zeros((K, 1, 3 * Ip), jnp.float32)
        for k in range(K):
            sl = slice(k * I, (k + 1) * I)
            w_heads = w_heads.at[k, :H, 0:I].set(wm[:, sl])
            w_heads = w_heads.at[k, :H, Ip:Ip + I].set(wv[:, sl])
            w_heads = w_heads.at[k, H:, 2 * Ip:2 * Ip + I].set(wmc[:, sl])
            b_heads = b_heads.at[k, 0, 0:I].set(bm[0, sl])
            b_heads = b_heads.at[k, 0, Ip:Ip + I].set(bv[0, sl])
            b_heads = b_heads.at[k, 0, 2 * Ip:2 * Ip + I].set(bmc[0, sl])
        kparams.append(w_heads.astype(jnp.bfloat16))
        kparams.append(b_heads)
        return kparams

    # -- per-generation batch tile -----------------------------------------
    def _pick_tile(self, B):
        cap = self._vmem_cap
        K, Ip = self.n_clusters, self.i_pad
        max_hidden = 2 * max(self.layer_sizes[1:])
        # 128 MiB parts (v5e/v6e): larger tiles amortise grid-step overhead.
        # 64 MiB / 2-TC parts (v7x): <=256 and keep >=2 parallel grid steps.
        base = 512 if cap >= 100 * 2 ** 20 else 256
        tile = min(base, _round_up(B, 8))
        if cap < 100 * 2 ** 20 and B > 8:
            half = _round_up((B + 1) // 2, 8)
            tile = min(tile, max(8, half))
        # keep in-kernel f32 temporaries well inside the VMEM budget.
        per_row = (K + 12) * Ip * 4 + 2 * max_hidden * 4 + self.in_dim * 2
        max_tile = max(8, (int(0.35 * cap) // per_row) // 8 * 8)
        tile = min(tile, max_tile)
        return _round_up(tile, 8)

    # -- build + cache one jitted forward per batch size ---------------------
    def _build_forward(self, B):
        K, I, Ip = self.n_clusters, self.input_size, self.i_pad
        D = self.in_dim
        tile_b = self._pick_tile(B)
        Bp = _round_up(B, tile_b)
        grid = (Bp // tile_b,)

        kernel = functools.partial(_vae_kernel, self.n_mlp, K, Ip, I)

        in_specs = [pl.BlockSpec((tile_b, D), lambda i: (i, 0))]
        for p in self.kernel_params:
            if p.ndim == 2:
                in_specs.append(pl.BlockSpec(p.shape, lambda i: (0, 0)))
            else:
                in_specs.append(pl.BlockSpec(p.shape, lambda i: (0, 0, 0)))

        out_shape = (
            jax.ShapeDtypeStruct((Bp, Ip), jnp.float32),     # mu_c  (padded lanes)
            jax.ShapeDtypeStruct((Bp, Ip), jnp.float32),     # std_c (padded lanes)
            jax.ShapeDtypeStruct((K, Bp, I), jnp.float32),   # clusters, unpadded
        )
        out_specs = (
            pl.BlockSpec((tile_b, Ip), lambda i: (i, 0)),
            pl.BlockSpec((tile_b, Ip), lambda i: (i, 0)),
            pl.BlockSpec((K, tile_b, I), lambda i: (0, i, 0)),
        )

        # advisory cost estimate for XLA's scheduler
        fused_dims = []
        fin = D
        for l in range(self.n_mlp):
            fout = 2 * self.layer_sizes[l + 1]
            fused_dims.append((fin, fout))
            fin = fout
        weight_bytes = sum(int(p.size) * p.dtype.itemsize for p in self.kernel_params)
        flops = Bp * (2 * sum(i * o for i, o in fused_dims) + 2 * K * fin * 3 * Ip)
        transcend = Bp * (sum(o for _, o in fused_dims) + 3 * K * Ip + Ip)
        bytes_accessed = (Bp * D * 2 + weight_bytes
                          + Bp * Ip * 4 * 2 + K * Bp * I * 4)
        cost = pl.CostEstimate(flops=int(flops), transcendentals=int(transcend),
                               bytes_accessed=int(bytes_accessed))

        # explicit VMEM budget (double-buffered IO + f32 temporaries), capped at
        # ~75% of this generation's physical VMEM (48 MiB on v7x, 96 on v5e/v6e).
        max_hidden = 2 * max(self.layer_sizes[1:])
        tmp_bytes = tile_b * ((K + 10) * Ip + 2 * max_hidden) * 4
        io_bytes = 2 * (tile_b * D * 2 + 2 * tile_b * Ip * 4 + K * tile_b * I * 4)
        vmem_est = io_bytes + 2 * weight_bytes + tmp_bytes
        vmem_limit = int(min(int(0.75 * self._vmem_cap),
                             max(32 * 2 ** 20, 2 * vmem_est)))

        call = pl.pallas_call(
            kernel,
            out_shape=out_shape,
            grid=grid,
            in_specs=in_specs,
            out_specs=out_specs,
            compiler_params=pltpu.CompilerParams(
                dimension_semantics=("parallel",),
                vmem_limit_bytes=vmem_limit),
            cost_estimate=cost,
        )

        def fwd(x, *kernel_params):
            xk = x.astype(jnp.bfloat16)
            if Bp != B:
                xk = jnp.pad(xk, ((0, Bp - B), (0, 0)))
            mu_p, std_p, cl = call(xk, *kernel_params)
            mu_c = mu_p[:B, :I]
            std_c = std_p[:B, :I]
            clusters = jnp.transpose(cl, (1, 2, 0))[:B]      # (B, I, K), as torch
            return mu_c, std_c, clusters

        return jax.jit(fwd)

    def __call__(self, x):
        B, D = x.shape
        assert D == self.in_dim
        fwd = self._forward_cache.get(B)
        if fwd is None:
            fwd = self._build_forward(B)
            self._forward_cache[B] = fwd
        return fwd(x, *self.kernel_params)


# ---------------------------------------------------------------------------
# Pure-JAX reference (mirrors the torch forward; same bf16 matmul precision
# as the kernel) for a correctness check
# ---------------------------------------------------------------------------
def _ref_forward(x, params, n_mlp, K, I):
    def lin(h, w, b):
        return jnp.dot(h.astype(jnp.bfloat16), w.astype(jnp.bfloat16),
                       preferred_element_type=jnp.float32) + b

    n_enc = 2 * n_mlp + 4
    enc, clu = params[:n_enc], params[n_enc:]
    h = x
    for l in range(n_mlp):
        h = jnp.tanh(lin(h, enc[2 * l], enc[2 * l + 1]))
    mu = lin(h, enc[2 * n_mlp], enc[2 * n_mlp + 1])
    lv = lin(h, enc[2 * n_mlp + 2], enc[2 * n_mlp + 3])
    hc = x
    for l in range(n_mlp):
        hc = jnp.tanh(lin(hc, clu[2 * l], clu[2 * l + 1]))
    cl = lin(hc, clu[2 * n_mlp], clu[2 * n_mlp + 1])
    std = jnp.exp(0.5 * lv)

    def routine(a):
        return a.reshape(-1, K, I).transpose(0, 2, 1)

    mu3, std3, cl3 = routine(mu), routine(std), routine(cl)
    sm = jax.nn.softmax(cl3, axis=2)
    mu_c = jnp.sum(sm * mu3, axis=2)
    std_c = jnp.sum(sm * std3, axis=2)
    return mu_c, std_c, sm


# ---------------------------------------------------------------------------
if __name__ == "__main__":
    # Small shapes consistent with the module: x is (batch, encoder_layer_sizes[0]).
    encoder_layer_sizes = [32, 64]
    latent_size = 16
    n_clusters = 4
    batch_size = 8

    model = PallasVAE(encoder_layer_sizes, latent_size, n_clusters, batch_size,
                      model_type='selector', seed=0)

    x = jax.random.normal(jax.random.PRNGKey(0),
                          (batch_size, encoder_layer_sizes[0]), dtype=jnp.float32)

    mu_c, std_c, clusters = model(x)
    jax.block_until_ready((mu_c, std_c, clusters))

    # sanity-check against the pure-JAX reference
    r_mu, r_std, r_cl = _ref_forward(x, model.params, model.n_mlp,
                                     n_clusters, model.input_size)
    assert mu_c.shape == (batch_size, model.input_size)
    assert std_c.shape == (batch_size, model.input_size)
    assert clusters.shape == (batch_size, model.input_size, n_clusters)
    # tolerance covers pl.reciprocal(approx=True) and tanh/exp ulp differences
    assert jnp.allclose(mu_c, r_mu, atol=5e-3, rtol=5e-3)
    assert jnp.allclose(std_c, r_std, atol=5e-3, rtol=5e-3)
    assert jnp.allclose(clusters, r_cl, atol=5e-3, rtol=5e-3)

    print("KERNEL_OK")
</pallas_src>

<mosaic_0001>
module attributes {stable_mosaic.version = 11 : i64} {
  func.func @_vae_kernel(%arg0: i32, %arg1: memref<8x32xbf16, #tpu.memory_space<vmem>>, %arg2: memref<32x128xbf16, #tpu.memory_space<vmem>>, %arg3: memref<1x128xf32, #tpu.memory_space<vmem>>, %arg4: memref<4x128x384xbf16, #tpu.memory_space<vmem>>, %arg5: memref<4x1x384xf32, #tpu.memory_space<vmem>>, %arg6: memref<8x128xf32, #tpu.memory_space<vmem>>, %arg7: memref<8x128xf32, #tpu.memory_space<vmem>>, %arg8: memref<4x8x4xf32, #tpu.memory_space<vmem>>) attributes {dimension_semantics = [#tpu.dimension_semantics<parallel>], iteration_bounds = array<i64: 1>, scalar_prefetch = 0 : i64, scratch_operands = 0 : i64, tpu.core_type = #tpu.core_type<tc>, window_params = [{transform_indices = @transform_0, window_bounds = array<i64: 8, 32>}, {pipeline_mode = #tpu.pipeline_mode<synchronous>, transform_indices = @transform_1, window_bounds = array<i64: 32, 128>}, {pipeline_mode = #tpu.pipeline_mode<synchronous>, transform_indices = @transform_2, window_bounds = array<i64: 1, 128>}, {pipeline_mode = #tpu.pipeline_mode<synchronous>, transform_indices = @transform_3, window_bounds = array<i64: 4, 128, 384>}, {pipeline_mode = #tpu.pipeline_mode<synchronous>, transform_indices = @transform_4, window_bounds = array<i64: 4, 1, 384>}, {transform_indices = @transform_5, window_bounds = array<i64: 8, 128>}, {transform_indices = @transform_6, window_bounds = array<i64: 8, 128>}, {transform_indices = @transform_7, window_bounds = array<i64: 4, 8, 4>}]} {
    %c0 = arith.constant 0 : index
    %c0_0 = arith.constant 0 : index
    %0 = vector.load %arg1[%c0, %c0_0] : memref<8x32xbf16, #tpu.memory_space<vmem>>, vector<8x32xbf16>
    %c0_1 = arith.constant 0 : index
    %c0_2 = arith.constant 0 : index
    %1 = vector.load %arg2[%c0_1, %c0_2] : memref<32x128xbf16, #tpu.memory_space<vmem>>, vector<32x128xbf16>
    %c0_3 = arith.constant 0 : index
    %c0_4 = arith.constant 0 : index
    %2 = vector.load %arg3[%c0_3, %c0_4] : memref<1x128xf32, #tpu.memory_space<vmem>>, vector<1x128xf32>
    %cst = arith.constant dense<0.000000e+00> : vector<8x128xf32>
    %3 = tpu.matmul %0, %1, %cst {dimension_numbers = #tpu.dot_dimension_numbers<[1], [0], [0], [1], [0, 0, 1, 1], [], []>} : vector<8x32xbf16>, vector<32x128xbf16>, vector<8x128xf32> -> vector<8x128xf32>
    %4 = vector.broadcast %2 : vector<1x128xf32> to vector<8x128xf32>
    %5 = arith.addf %3, %4 : vector<8x128xf32>
    %6 = math.tanh %5 : vector<8x128xf32>
    %7 = arith.truncf %6 : vector<8x128xf32> to vector<8x128xbf16>
    %c0_5 = arith.constant 0 : index
    %c0_6 = arith.constant 0 : index
    %c0_7 = arith.constant 0 : index
    %8 = vector.load %arg4[%c0_5, %c0_6, %c0_7] : memref<4x128x384xbf16, #tpu.memory_space<vmem>>, vector<1x128x384xbf16>
    %9 = vector.shape_cast %8 : vector<1x128x384xbf16> to vector<128x384xbf16>
    %cst_8 = arith.constant dense<0.000000e+00> : vector<8x384xf32>
    %10 = tpu.matmul %7, %9, %cst_8 {dimension_numbers = #tpu.dot_dimension_numbers<[1], [0], [0], [1], [0, 0, 1, 1], [], []>} : vector<8x128xbf16>, vector<128x384xbf16>, vector<8x384xf32> -> vector<8x384xf32>
    %c0_9 = arith.constant 0 : index
    %c0_10 = arith.constant 0 : index
    %c0_11 = arith.constant 0 : index
    %11 = vector.load %arg5[%c0_9, %c0_10, %c0_11] : memref<4x1x384xf32, #tpu.memory_space<vmem>>, vector<1x1x384xf32>
    %12 = vector.shape_cast %11 : vector<1x1x384xf32> to vector<1x384xf32>
    %13 = vector.broadcast %12 : vector<1x384xf32> to vector<8x384xf32>
    %14 = arith.addf %10, %13 : vector<8x384xf32>
    %15 = vector.extract_strided_slice %14 {offsets = [0, 0], sizes = [8, 128], strides = [1, 1]} : vector<8x384xf32> to vector<8x128xf32>
    %16 = vector.extract_strided_slice %14 {offsets = [0, 128], sizes = [8, 128], strides = [1, 1]} : vector<8x384xf32> to vector<8x128xf32>
    %cst_12 = arith.constant 5.000000e-01 : f32
    %17 = vector.broadcast %cst_12 : f32 to vector<8x128xf32>
    %18 = arith.mulf %17, %16 : vector<8x128xf32>
    %19 = math.exp %18 : vector<8x128xf32>
    %20 = vector.extract_strided_slice %14 {offsets = [0, 256], sizes = [8, 128], strides = [1, 1]} : vector<8x384xf32> to vector<8x128xf32>
    %cst_13 = arith.constant 1.000000e+00 : f32
    %21 = vector.broadcast %cst_13 : f32 to vector<8x128xf32>
    %c1 = arith.constant 1 : index
    %c0_14 = arith.constant 0 : index
    %c0_15 = arith.constant 0 : index
    %22 = vector.load %arg4[%c1, %c0_14, %c0_15] : memref<4x128x384xbf16, #tpu.memory_space<vmem>>, vector<1x128x384xbf16>
    %23 = vector.shape_cast %22 : vector<1x128x384xbf16> to vector<128x384xbf16>
    %cst_16 = arith.constant dense<0.000000e+00> : vector<8x384xf32>
    %24 = tpu.matmul %7, %23, %cst_16 {dimension_numbers = #tpu.dot_dimension_numbers<[1], [0], [0], [1], [0, 0, 1, 1], [], []>} : vector<8x128xbf16>, vector<128x384xbf16>, vector<8x384xf32> -> vector<8x384xf32>
    %c1_17 = arith.constant 1 : index
    %c0_18 = arith.constant 0 : index
    %c0_19 = arith.constant 0 : index
    %25 = vector.load %arg5[%c1_17, %c0_18, %c0_19] : memref<4x1x384xf32, #tpu.memory_space<vmem>>, vector<1x1x384xf32>
    %26 = vector.shape_cast %25 : vector<1x1x384xf32> to vector<1x384xf32>
    %27 = vector.broadcast %26 : vector<1x384xf32> to vector<8x384xf32>
    %28 = arith.addf %24, %27 : vector<8x384xf32>
    %29 = vector.extract_strided_slice %28 {offsets = [0, 0], sizes = [8, 128], strides = [1, 1]} : vector<8x384xf32> to vector<8x128xf32>
    %30 = vector.extract_strided_slice %28 {offsets = [0, 128], sizes = [8, 128], strides = [1, 1]} : vector<8x384xf32> to vector<8x128xf32>
    %cst_20 = arith.constant 5.000000e-01 : f32
    %31 = vector.broadcast %cst_20 : f32 to vector<8x128xf32>
    %32 = arith.mulf %31, %30 : vector<8x128xf32>
    %33 = math.exp %32 : vector<8x128xf32>
    %34 = vector.extract_strided_slice %28 {offsets = [0, 256], sizes = [8, 128], strides = [1, 1]} : vector<8x384xf32> to vector<8x128xf32>
    %35 = arith.maximumf %20, %34 : vector<8x128xf32>
    %36 = arith.subf %20, %35 : vector<8x128xf32>
    %37 = math.exp %36 : vector<8x128xf32>
    %38 = arith.subf %34, %35 : vector<8x128xf32>
    %39 = math.exp %38 : vector<8x128xf32>
    %40 = arith.mulf %37, %21 : vector<8x128xf32>
    %41 = arith.addf %40, %39 : vector<8x128xf32>
    %42 = arith.mulf %37, %15 : vector<8x128xf32>
    %43 = arith.mulf %39, %29 : vector<8x128xf32>
    %44 = arith.addf %42, %43 : vector<8x128xf32>
    %45 = arith.mulf %37, %19 : vector<8x128xf32>
    %46 = arith.mulf %39, %33 : vector<8x128xf32>
    %47 = arith.addf %45, %46 : vector<8x128xf32>
    %c2 = arith.constant 2 : index
    %c0_21 = arith.constant 0 : index
    %c0_22 = arith.constant 0 : index
    %48 = vector.load %arg4[%c2, %c0_21, %c0_22] : memref<4x128x384xbf16, #tpu.memory_space<vmem>>, vector<1x128x384xbf16>
    %49 = vector.shape_cast %48 : vector<1x128x384xbf16> to vector<128x384xbf16>
    %cst_23 = arith.constant dense<0.000000e+00> : vector<8x384xf32>
    %50 = tpu.matmul %7, %49, %cst_23 {dimension_numbers = #tpu.dot_dimension_numbers<[1], [0], [0], [1], [0, 0, 1, 1], [], []>} : vector<8x128xbf16>, vector<128x384xbf16>, vector<8x384xf32> -> vector<8x384xf32>
    %c2_24 = arith.constant 2 : index
    %c0_25 = arith.constant 0 : index
    %c0_26 = arith.constant 0 : index
    %51 = vector.load %arg5[%c2_24, %c0_25, %c0_26] : memref<4x1x384xf32, #tpu.memory_space<vmem>>, vector<1x1x384xf32>
    %52 = vector.shape_cast %51 : vector<1x1x384xf32> to vector<1x384xf32>
    %53 = vector.broadcast %52 : vector<1x384xf32> to vector<8x384xf32>
    %54 = arith.addf %50, %53 : vector<8x384xf32>
    %55 = vector.extract_strided_slice %54 {offsets = [0, 0], sizes = [8, 128], strides = [1, 1]} : vector<8x384xf32> to vector<8x128xf32>
    %56 = vector.extract_strided_slice %54 {offsets = [0, 128], sizes = [8, 128], strides = [1, 1]} : vector<8x384xf32> to vector<8x128xf32>
    %cst_27 = arith.constant 5.000000e-01 : f32
    %57 = vector.broadcast %cst_27 : f32 to vector<8x128xf32>
    %58 = arith.mulf %57, %56 : vector<8x128xf32>
    %59 = math.exp %58 : vector<8x128xf32>
    %60 = vector.extract_strided_slice %54 {offsets = [0, 256], sizes = [8, 128], strides = [1, 1]} : vector<8x384xf32> to vector<8x128xf32>
    %61 = arith.maximumf %35, %60 : vector<8x128xf32>
    %62 = arith.subf %35, %61 : vector<8x128xf32>
    %63 = math.exp %62 : vector<8x128xf32>
    %64 = arith.subf %60, %61 : vector<8x128xf32>
    %65 = math.exp %64 : vector<8x128xf32>
    %66 = arith.mulf %63, %41 : vector<8x128xf32>
    %67 = arith.addf %66, %65 : vector<8x128xf32>
    %68 = arith.mulf %63, %44 : vector<8x128xf32>
    %69 = arith.mulf %65, %55 : vector<8x128xf32>
    %70 = arith.addf %68, %69 : vector<8x128xf32>
    %71 = arith.mulf %63, %47 : vector<8x128xf32>
    %72 = arith.mulf %65, %59 : vector<8x128xf32>
    %73 = arith.addf %71, %72 : vector<8x128xf32>
    %c3 = arith.constant 3 : index
    %c0_28 = arith.constant 0 : index
    %c0_29 = arith.constant 0 : index
    %74 = vector.load %arg4[%c3, %c0_28, %c0_29] : memref<4x128x384xbf16, #tpu.memory_space<vmem>>, vector<1x128x384xbf16>
    %75 = vector.shape_cast %74 : vector<1x128x384xbf16> to vector<128x384xbf16>
    %cst_30 = arith.constant dense<0.000000e+00> : vector<8x384xf32>
    %76 = tpu.matmul %7, %75, %cst_30 {dimension_numbers = #tpu.dot_dimension_numbers<[1], [0], [0], [1], [0, 0, 1, 1], [], []>} : vector<8x128xbf16>, vector<128x384xbf16>, vector<8x384xf32> -> vector<8x384xf32>
    %c3_31 = arith.constant 3 : index
    %c0_32 = arith.constant 0 : index
    %c0_33 = arith.constant 0 : index
    %77 = vector.load %arg5[%c3_31, %c0_32, %c0_33] : memref<4x1x384xf32, #tpu.memory_space<vmem>>, vector<1x1x384xf32>
    %78 = vector.shape_cast %77 : vector<1x1x384xf32> to vector<1x384xf32>
    %79 = vector.broadcast %78 : vector<1x384xf32> to vector<8x384xf32>
    %80 = arith.addf %76, %79 : vector<8x384xf32>
    %81 = vector.extract_strided_slice %80 {offsets = [0, 0], sizes = [8, 128], strides = [1, 1]} : vector<8x384xf32> to vector<8x128xf32>
    %82 = vector.extract_strided_slice %80 {offsets = [0, 128], sizes = [8, 128], strides = [1, 1]} : vector<8x384xf32> to vector<8x128xf32>
    %cst_34 = arith.constant 5.000000e-01 : f32
    %83 = vector.broadcast %cst_34 : f32 to vector<8x128xf32>
    %84 = arith.mulf %83, %82 : vector<8x128xf32>
    %85 = math.exp %84 : vector<8x128xf32>
    %86 = vector.extract_strided_slice %80 {offsets = [0, 256], sizes = [8, 128], strides = [1, 1]} : vector<8x384xf32> to vector<8x128xf32>
    %87 = arith.maximumf %61, %86 : vector<8x128xf32>
    %88 = arith.subf %61, %87 : vector<8x128xf32>
    %89 = math.exp %88 : vector<8x128xf32>
    %90 = arith.subf %86, %87 : vector<8x128xf32>
    %91 = math.exp %90 : vector<8x128xf32>
    %92 = arith.mulf %89, %67 : vector<8x128xf32>
    %93 = arith.addf %92, %91 : vector<8x128xf32>
    %94 = arith.mulf %89, %70 : vector<8x128xf32>
    %95 = arith.mulf %91, %81 : vector<8x128xf32>
    %96 = arith.addf %94, %95 : vector<8x128xf32>
    %97 = arith.mulf %89, %73 : vector<8x128xf32>
    %98 = arith.mulf %91, %85 : vector<8x128xf32>
    %99 = arith.addf %97, %98 : vector<8x128xf32>
    %100 = tpu.reciprocal %93 {approx = true} : vector<8x128xf32> -> vector<8x128xf32>
    %101 = arith.mulf %96, %100 : vector<8x128xf32>
    %c0_35 = arith.constant 0 : index
    %c0_36 = arith.constant 0 : index
    %102 = vector.load %arg6[%c0_35, %c0_36] : memref<8x128xf32, #tpu.memory_space<vmem>>, vector<8x128xf32>
    tpu.vector_store %arg6[%c0_35, %c0_36], %101 {strides = array<i32>} : memref<8x128xf32, #tpu.memory_space<vmem>>, vector<8x128xf32>,
    %103 = arith.mulf %99, %100 : vector<8x128xf32>
    %c0_37 = arith.constant 0 : index
    %c0_38 = arith.constant 0 : index
    %104 = vector.load %arg7[%c0_37, %c0_38] : memref<8x128xf32, #tpu.memory_space<vmem>>, vector<8x128xf32>
    tpu.vector_store %arg7[%c0_37, %c0_38], %103 {strides = array<i32>} : memref<8x128xf32, #tpu.memory_space<vmem>>, vector<8x128xf32>,
    %105 = arith.subf %20, %87 : vector<8x128xf32>
    %106 = math.exp %105 : vector<8x128xf32>
    %107 = arith.mulf %106, %100 : vector<8x128xf32>
    %108 = vector.extract_strided_slice %107 {offsets = [0, 0], sizes = [8, 4], strides = [1, 1]} : vector<8x128xf32> to vector<8x4xf32>
    %c0_39 = arith.constant 0 : index
    %c0_40 = arith.constant 0 : index
    %c0_41 = arith.constant 0 : index
    %109 = vector.load %arg8[%c0_39, %c0_40, %c0_41] : memref<4x8x4xf32, #tpu.memory_space<vmem>>, vector<1x8x4xf32>
    %110 = vector.shape_cast %109 : vector<1x8x4xf32> to vector<8x4xf32>
    %111 = vector.shape_cast %108 : vector<8x4xf32> to vector<1x8x4xf32>
    tpu.vector_store %arg8[%c0_39, %c0_40, %c0_41], %111 {strides = array<i32>} : memref<4x8x4xf32, #tpu.memory_space<vmem>>, vector<1x8x4xf32>,
    %112 = arith.subf %34, %87 : vector<8x128xf32>
    %113 = math.exp %112 : vector<8x128xf32>
    %114 = arith.mulf %113, %100 : vector<8x128xf32>
    %115 = vector.extract_strided_slice %114 {offsets = [0, 0], sizes = [8, 4], strides = [1, 1]} : vector<8x128xf32> to vector<8x4xf32>
    %c1_42 = arith.constant 1 : index
    %c0_43 = arith.constant 0 : index
    %c0_44 = arith.constant 0 : index
    %116 = vector.load %arg8[%c1_42, %c0_43, %c0_44] : memref<4x8x4xf32, #tpu.memory_space<vmem>>, vector<1x8x4xf32>
    %117 = vector.shape_cast %116 : vector<1x8x4xf32> to vector<8x4xf32>
    %118 = vector.shape_cast %115 : vector<8x4xf32> to vector<1x8x4xf32>
    tpu.vector_store %arg8[%c1_42, %c0_43, %c0_44], %118 {strides = array<i32>} : memref<4x8x4xf32, #tpu.memory_space<vmem>>, vector<1x8x4xf32>,
    %119 = arith.subf %60, %87 : vector<8x128xf32>
    %120 = math.exp %119 : vector<8x128xf32>
    %121 = arith.mulf %120, %100 : vector<8x128xf32>
    %122 = vector.extract_strided_slice %121 {offsets = [0, 0], sizes = [8, 4], strides = [1, 1]} : vector<8x128xf32> to vector<8x4xf32>
    %c2_45 = arith.constant 2 : index
    %c0_46 = arith.constant 0 : index
    %c0_47 = arith.constant 0 : index
    %123 = vector.load %arg8[%c2_45, %c0_46, %c0_47] : memref<4x8x4xf32, #tpu.memory_space<vmem>>, vector<1x8x4xf32>
    %124 = vector.shape_cast %123 : vector<1x8x4xf32> to vector<8x4xf32>
    %125 = vector.shape_cast %122 : vector<8x4xf32> to vector<1x8x4xf32>
    tpu.vector_store %arg8[%c2_45, %c0_46, %c0_47], %125 {strides = array<i32>} : memref<4x8x4xf32, #tpu.memory_space<vmem>>, vector<1x8x4xf32>,
    %126 = arith.subf %86, %87 : vector<8x128xf32>
    %127 = math.exp %126 : vector<8x128xf32>
    %128 = arith.mulf %127, %100 : vector<8x128xf32>
    %129 = vector.extract_strided_slice %128 {offsets = [0, 0], sizes = [8, 4], strides = [1, 1]} : vector<8x128xf32> to vector<8x4xf32>
    %c3_48 = arith.constant 3 : index
    %c0_49 = arith.constant 0 : index
    %c0_50 = arith.constant 0 : index
    %130 = vector.load %arg8[%c3_48, %c0_49, %c0_50] : memref<4x8x4xf32, #tpu.memory_space<vmem>>, vector<1x8x4xf32>
    %131 = vector.shape_cast %130 : vector<1x8x4xf32> to vector<8x4xf32>
    %132 = vector.shape_cast %129 : vector<8x4xf32> to vector<1x8x4xf32>
    tpu.vector_store %arg8[%c3_48, %c0_49, %c0_50], %132 {strides = array<i32>} : memref<4x8x4xf32, #tpu.memory_space<vmem>>, vector<1x8x4xf32>,
    return
  }
  func.func @transform_0(%arg0: i32) -> (i32, i32) {
    %c0_i32 = arith.constant 0 : i32
    %c0_i32_0 = arith.constant 0 : i32
    return %arg0, %c0_i32 : i32, i32
  }
  func.func @transform_1(%arg0: i32) -> (i32, i32) {
    %c0_i32 = arith.constant 0 : i32
    %c0_i32_0 = arith.constant 0 : i32
    %c0_i32_1 = arith.constant 0 : i32
    return %c0_i32, %c0_i32_0 : i32, i32
  }
  func.func @transform_2(%arg0: i32) -> (i32, i32) {
    %c0_i32 = arith.constant 0 : i32
    %c0_i32_0 = arith.constant 0 : i32
    %c0_i32_1 = arith.constant 0 : i32
    return %c0_i32, %c0_i32_0 : i32, i32
  }
  func.func @transform_3(%arg0: i32) -> (i32, i32, i32) {
    %c0_i32 = arith.constant 0 : i32
    %c0_i32_0 = arith.constant 0 : i32
    %c0_i32_1 = arith.constant 0 : i32
    %c0_i32_2 = arith.constant 0 : i32
    return %c0_i32, %c0_i32_0, %c0_i32_1 : i32, i32, i32
  }
  func.func @transform_4(%arg0: i32) -> (i32, i32, i32) {
    %c0_i32 = arith.constant 0 : i32
    %c0_i32_0 = arith.constant 0 : i32
    %c0_i32_1 = arith.constant 0 : i32
    %c0_i32_2 = arith.constant 0 : i32
    return %c0_i32, %c0_i32_0, %c0_i32_1 : i32, i32, i32
  }
  func.func @transform_5(%arg0: i32) -> (i32, i32) {
    %c0_i32 = arith.constant 0 : i32
    %c0_i32_0 = arith.constant 0 : i32
    return %arg0, %c0_i32 : i32, i32
  }
  func.func @transform_6(%arg0: i32) -> (i32, i32) {
    %c0_i32 = arith.constant 0 : i32
    %c0_i32_0 = arith.constant 0 : i32
    return %arg0, %c0_i32 : i32, i32
  }
  func.func @transform_7(%arg0: i32) -> (i32, i32, i32) {
    %c0_i32 = arith.constant 0 : i32
    %c0_i32_0 = arith.constant 0 : i32
    %c0_i32_1 = arith.constant 0 : i32
    return %c0_i32, %arg0, %c0_i32_0 : i32, i32, i32
  }
}

</mosaic_0001>

<bundles_post_ra>
// kernel: fwd.1
= control target key start
LH: loop header
LB: loop body
LE: loop exit
PB: predicated region body
PF: predicated region fallthrough
CT: control target
= control target key end

     0   :  { %13 = vsyncpa [#allocation3], 0  ;;  %s1906_s0 = inlined_call_operand.vmem [shape: bf16[8,32], index: 0, kind: input, shape index: {}]   ;;  %s1907_s1 = inlined_call_operand.hbm [shape: bf16[32,128], index: 1, kind: input, shape index: {}]   ;;  %s1908_s2 = inlined_call_operand.vmem [shape: f32[1,128], index: 2, kind: input, shape index: {}]   ;;  %s1909_s3 = inlined_call_operand.hbm [shape: bf16[4,128,384], index: 3, kind: input, shape index: {}]   ;;  %s1910_s4 = inlined_call_operand.vmem [shape: f32[4,1,384], index: 4, kind: input, shape index: {}]   ;;  %s1911_s5 = inlined_call_operand.vmem [shape: f32[8,128], index: 5, kind: output, shape index: {0}]   ;;  %s1912_s6 = inlined_call_operand.vmem [shape: f32[8,128], index: 6, kind: output, shape index: {1}]   ;;  %s1913_s7 = inlined_call_operand.vmem [shape: f32[4,8,4], index: 7, kind: output, shape index: {2}]  }
   0x1   :  { %14 = vsyncpa [#allocation5], 0  ;;  %s1706_s24 = smov [#allocation2]   ;;  %s1658_s28 = scalar_lea.hbm %s1907_s1, 256 }
   0x2   :  { %s22_s25 = sshll.u32 %s1706_s24, 4  ;;  %p1659_p0 = scmp.ne.s32.totalorder %s1907_s1, %s1658_s28  ;;  %s23_s25 = int_to_ptr.vmem [resolvable:$true] %s22_s25 }
   0x3   :  { %p1662_p1 = scmp.lt.u32.totalorder %s1658_s28, %s1907_s1 }
   0x5   :  { %p1664_p2 = pnand %p1662_p1, %p1659_p0 }
   0x7   :  { %1667 = shalt.err (!%p1664_p2)
}
   0x8   :  { %s1668_s10 = scalar_lea.vmem %s23_s25, 256  ;;  %p1673_p4 = scmp.lt.s32.totalorder %s23_s25, %s23_s25 }
   0x9   :  { %p1669_p3 = scmp.ne.s32.totalorder %s23_s25, %s1668_s10  ;;  %p1674_p5 = scmp.lt.s32.totalorder %s1668_s10, %s1668_s10 }
   0xb   :  { %p1675_p6 = por %p1674_p5, %p1673_p4 }
   0xd   :  { %p1676_p7 = pnand %p1675_p6, %p1669_p3 }
   0xf   :  { %1679 = shalt.err (!%p1676_p7)
}
  0x10   :  { %s1707_s11 = smov 64   ;;  %s1708_s12 = smov 4  }
  0x11   :  { %28 = dma.hbm_to_vmem [thread:$0]  %s1907_s1, 256, %s23_s25, [#allocation3], %s1707_s11, %s1707_s11, %s1708_s12  }
  0x12   :  { %s1709_s15 = smov [#allocation4]   ;;  %s1680_s19 = scalar_lea.hbm %s1909_s3, 12288 }
  0x13   :  { %s36_s16 = sshll.u32 %s1709_s15, 4  ;;  %p1681_p8 = scmp.ne.s32.totalorder %s1909_s3, %s1680_s19  ;;  %s37_s16 = int_to_ptr.vmem [resolvable:$true] %s36_s16 }
  0x14   :  { %p1684_p9 = scmp.lt.u32.totalorder %s1680_s19, %s1909_s3 }
  0x16   :  { %p1686_p10 = pnand %p1684_p9, %p1681_p8 }
  0x18   :  { %1689 = shalt.err (!%p1686_p10)
}
  0x19   :  { %s1690_s24 = scalar_lea.vmem %s37_s16, 12288  ;;  %p1695_p12 = scmp.lt.s32.totalorder %s37_s16, %s37_s16 }
  0x1a   :  { %p1691_p11 = scmp.ne.s32.totalorder %s37_s16, %s1690_s24  ;;  %p1696_p13 = scmp.lt.s32.totalorder %s1690_s24, %s1690_s24 }
  0x1c   :  { %p1697_p0 = por %p1696_p13, %p1695_p12 }
  0x1e   :  { %p1698_p1 = pnand %p1697_p0, %p1691_p11 }
  0x20   :  { %1701 = shalt.err (!%p1698_p1)
}
  0x21   :  { %s1710_s1 = smov 192   ;;  %s1711_s25 = smov 12  }
  0x22   :  { %42 = dma.hbm_to_vmem [thread:$0]  %s1909_s3, 12288, %s37_s16, [#allocation5], %s1710_s1, %s1710_s1, %s1711_s25  }
  0x23   :  { %1702 = dma.done.wait [#allocation3], 256  }
  0x24   :  { %1703 = vsyncadd [#allocation3], 4294967040 }
  0x25   :  { %1704 = dma.done.wait [#allocation5], 12288  }
  0x26   :  { %1705 = vsyncadd [#allocation5], 4294955008  ;;  %v1712_v0 = vmov 0.0   ;;  %vm1713_vm0 = vmmov 0   ;;  %v1498_v1 = vld [vmem:[#allocation2] sm:$0xff]   ;;  %v1499_v2 = vld [vmem:[#allocation2 + $0x8] sm:$0xff]  }
  0x27   :  { %1401 = vmatprep.subr.bf16.mxu0 %v1712_v0  ;;  %1405 = vmatprep.mubr.msk.bf16.mxu0 %vm1713_vm0, %v1712_v0  ;;  %v1500_v3 = vld [vmem:[#allocation4 + $0x4] ss:$12 sps:$4 sm:$0xff]   ;;  %v1502_v4 = vld [vmem:[#allocation4] ss:$12 sps:$4 sm:$0xff]   ;;  %vm76_vm1 = vcmask 261120   ;;  %v1714_v29 = vmov 0  }
  0x28   :  { %1402 = vmatpush3.bf16.msra.mxu0 %v1498_v1  ;;  %v52_v5 = vld [vmem:[%s1906_s0] sm:$0xf]  ;;  %299 = vmatprep.subr.bf16.mxu1 %v1500_v3  ;;  %v1503_v6 = vld [vmem:[#allocation4 + $0x8] ss:$12 sps:$4 sm:$0xff]   ;;  %v1506_v8 = vld [vmem:[#allocation4 + $0x18] ss:$12 sps:$4 sm:$0xff]  }
  0x29   :  { %1403 = vmatprep.subr.bf16.mxu0 %v1712_v0  ;;  %v1504_v7 = vld [vmem:[#allocation4 + $0x1c] ss:$12 sps:$4 sm:$0xff]   ;;  %300 = vmatpush1.bf16.msra.mxu1 %v1502_v4  ;;  %v1508_v9 = vld [vmem:[#allocation4 + $0x34] ss:$12 sps:$4 sm:$0xff]   ;;  %v1512_v12 = vld [vmem:[#allocation4 + $0x4c] ss:$12 sps:$4 sm:$0xff]  }
  0x2a   :  { %301 = vmatprep.subr.bf16.mxu1 %v1504_v7  ;;  %v1507_v10 = vld [vmem:[#allocation4 + $0x20] ss:$12 sps:$4 sm:$0xff]   ;;  %v1510_v11 = vld [vmem:[#allocation4 + $0x30] ss:$12 sps:$4 sm:$0xff]   ;;  %v1511_v13 = vld [vmem:[#allocation4 + $0x38] ss:$12 sps:$4 sm:$0xff]   ;;  %331 = vmatprep.mubr.bf16.mxu1 %v1714_v29 }
  0x2b   :  { %v1514_v14 = vld [vmem:[#allocation4 + $0x48] ss:$12 sps:$4 sm:$0xff]   ;;  %v1516_v15 = vld [vmem:[#allocation4 + $0x64] ss:$12 sps:$4 sm:$0xff]   ;;  %v1518_v17 = vld [vmem:[#allocation4 + $0x60] ss:$12 sps:$4 sm:$0xff]  }
  0x2c   :  { %1404 = vmatpush3.bf16.msra.mxu0 %v1499_v2  ;;  %v1515_v16 = vld [vmem:[#allocation4 + $0x50] ss:$12 sps:$4 sm:$0xff]   ;;  %v1519_v18 = vld [vmem:[#allocation4 + $0x68] ss:$12 sps:$4 sm:$0xff]   ;;  %v1522_v20 = vld [vmem:[#allocation4 + $0x78] ss:$12 sps:$4 sm:$0xff]  }
  0x2d   :  { %1409 = vmatprep.subr.bf16.mxu0 %v1712_v0  ;;  %302 = vmatpush1.bf16.msra.mxu1 %v1506_v8  ;;  %v1520_v19 = vld [vmem:[#allocation4 + $0x7c] ss:$12 sps:$4 sm:$0xff]   ;;  %v1523_v21 = vld [vmem:[#allocation4 + $0x80] ss:$12 sps:$4 sm:$0xff]   ;;  %v1527_v24 = vld [vmem:[#allocation4 + $0x98] ss:$12 sps:$4 sm:$0xff]  }
  0x2e   :  { %303 = vmatprep.subr.bf16.mxu1 %v1508_v9  ;;  %v1524_v22 = vld [vmem:[#allocation4 + $0x94] ss:$12 sps:$4 sm:$0xff]   ;;  %v1526_v23 = vld [vmem:[#allocation4 + $0x90] ss:$12 sps:$4 sm:$0xff]   ;;  %v1528_v25 = vld [vmem:[#allocation4 + $0xac] ss:$12 sps:$4 sm:$0xff]  }
  0x2f   :  { %1406 = vmatmul.mubr.msk.bf16.vlgmr.msra.gmra.mrb[0].mxu0 %vm76_vm1, %v52_v5  ;;  %v1530_v26 = vld [vmem:[#allocation4 + $0xa8] ss:$12 sps:$4 sm:$0xff]   ;;  %v1531_v27 = vld [vmem:[#allocation4 + $0xb0] ss:$12 sps:$4 sm:$0xff]   ;;  %v1532_v37 = vld [vmem:[#allocation4 + $0xc0] ss:$12 sps:$4 sm:$0xff]  }
  0x30   :  { %1410 = vmatpush3.bf16.msra.mxu0 %v1503_v6  ;;  %1425 = vmatprep.mubr.msk.bf16.mxu0 %vm1713_vm0, %v1712_v0  ;;  %v1534_v28 = vld [vmem:[#allocation4 + $0xc4] ss:$12 sps:$4 sm:$0xff]   ;;  %v1535_v38 = vld [vmem:[#allocation4 + $0xc8] ss:$12 sps:$4 sm:$0xff]   ;;  %v1539_v42 = vld [vmem:[#allocation4 + $0xe0] ss:$12 sps:$4 sm:$0xff]  }
  0x31   :  { %1411 = vmatprep.subr.bf16.mxu0 %v1712_v0  ;;  %304 = vmatpush1.bf16.msra.mxu1 %v1510_v11  ;;  %v1256_v30 = vld [vmem:[%s1908_s2] ss:$0 sm:$0xff]  ;;  %v1538_v40 = vld [vmem:[#allocation4 + $0xdc] ss:$12 sps:$4 sm:$0xff]   ;;  %v1536_v41 = vld [vmem:[#allocation4 + $0xd8] ss:$12 sps:$4 sm:$0xff]  }
  0x32   :  { %305 = vmatprep.subr.bf16.mxu1 %v1512_v12  ;;  %v1542_v43 = vld [vmem:[#allocation4 + $0xf4] ss:$12 sps:$4 sm:$0xff]   ;;  %v1540_v44 = vld [vmem:[#allocation4 + $0xf0] ss:$12 sps:$4 sm:$0xff]   ;;  %v1543_v45 = vld [vmem:[#allocation4 + $0xf8] ss:$12 sps:$4 sm:$0xff]  }
  0x33   :  { %v1546_v46 = vld [vmem:[#allocation4 + $0x10c] ss:$12 sps:$4 sm:$0xff]   ;;  %v1544_v47 = vld [vmem:[#allocation4 + $0x108] ss:$12 sps:$4 sm:$0xff]   ;;  %v1547_v48 = vld [vmem:[#allocation4 + $0x110] ss:$12 sps:$4 sm:$0xff]  }
  0x34   :  { %1412 = vmatpush3.bf16.msra.mxu0 %v1507_v10  ;;  %v1550_v49 = vld [vmem:[#allocation4 + $0x124] ss:$12 sps:$4 sm:$0xff]   ;;  %v1548_v50 = vld [vmem:[#allocation4 + $0x120] ss:$12 sps:$4 sm:$0xff]   ;;  %v1551_v51 = vld [vmem:[#allocation4 + $0x128] ss:$12 sps:$4 sm:$0xff]  }
  0x35   :  { %1413 = vmatprep.subr.bf16.mxu0 %v1712_v0  ;;  %306 = vmatpush1.bf16.msra.mxu1 %v1514_v14  ;;  %v1554_v52 = vld [vmem:[#allocation4 + $0x13c] ss:$12 sps:$4 sm:$0xff]   ;;  %v1552_v53 = vld [vmem:[#allocation4 + $0x138] ss:$12 sps:$4 sm:$0xff]   ;;  %v1555_v54 = vld [vmem:[#allocation4 + $0x140] ss:$12 sps:$4 sm:$0xff]  }
  0x36   :  { %307 = vmatprep.subr.bf16.mxu1 %v1516_v15  ;;  %v1558_v55 = vld [vmem:[#allocation4 + $0x154] ss:$12 sps:$4 sm:$0xff]   ;;  %v1556_v56 = vld [vmem:[#allocation4 + $0x150] ss:$12 sps:$4 sm:$0xff]   ;;  %v1559_v57 = vld [vmem:[#allocation4 + $0x158] ss:$12 sps:$4 sm:$0xff]  }
  0x37   :  { %v1562_v58 = vld [vmem:[#allocation4 + $0x16c] ss:$12 sps:$4 sm:$0xff]   ;;  %v1560_v59 = vld [vmem:[#allocation4 + $0x168] ss:$12 sps:$4 sm:$0xff]   ;;  %v1563_v60 = vld [vmem:[#allocation4 + $0x170] ss:$12 sps:$4 sm:$0xff]  }
  0x38   :  { %1414 = vmatpush3.bf16.msra.mxu0 %v1511_v13  ;;  %v1566_v61 = vld [vmem:[#allocation4 + $0x184] ss:$12 sps:$4 sm:$0xff]   ;;  %v1564_v62 = vld [vmem:[#allocation4 + $0x180] ss:$12 sps:$4 sm:$0xff]   ;;  %v1567_v63 = vld [vmem:[#allocation4 + $0x188] ss:$12 sps:$4 sm:$0xff]  }
  0x39   :  { %1415 = vmatprep.subr.bf16.mxu0 %v1712_v0  ;;  %308 = vmatpush1.bf16.msra.mxu1 %v1518_v17  ;;  %v1570_v1 = vld [vmem:[#allocation4 + $0x19c] ss:$12 sps:$4 sm:$0xff]   ;;  %v1568_v2 = vld [vmem:[#allocation4 + $0x198] ss:$12 sps:$4 sm:$0xff]   ;;  %v1571_v3 = vld [vmem:[#allocation4 + $0x1a0] ss:$12 sps:$4 sm:$0xff]  }
  0x3a   :  { %309 = vmatprep.subr.bf16.mxu1 %v1520_v19  ;;  %v1574_v4 = vld [vmem:[#allocation4 + $0x1b4] ss:$12 sps:$4 sm:$0xff]   ;;  %v1572_v5 = vld [vmem:[#allocation4 + $0x1b0] ss:$12 sps:$4 sm:$0xff]   ;;  %v1575_v6 = vld [vmem:[#allocation4 + $0x1b8] ss:$12 sps:$4 sm:$0xff]  }
  0x3b   :  { %v1578_v7 = vld [vmem:[#allocation4 + $0x1cc] ss:$12 sps:$4 sm:$0xff]   ;;  %v1576_v8 = vld [vmem:[#allocation4 + $0x1c8] ss:$12 sps:$4 sm:$0xff]   ;;  %v1579_v9 = vld [vmem:[#allocation4 + $0x1d0] ss:$12 sps:$4 sm:$0xff]  }
  0x3c   :  { %1416 = vmatpush3.bf16.msra.mxu0 %v1515_v16  ;;  %v1582_v10 = vld [vmem:[#allocation4 + $0x1e4] ss:$12 sps:$4 sm:$0xff]   ;;  %v1580_v11 = vld [vmem:[#allocation4 + $0x1e0] ss:$12 sps:$4 sm:$0xff]   ;;  %v1583_v12 = vld [vmem:[#allocation4 + $0x1e8] ss:$12 sps:$4 sm:$0xff]  }
  0x3d   :  { %1417 = vmatprep.subr.bf16.mxu0 %v1712_v0  ;;  %310 = vmatpush1.bf16.msra.mxu1 %v1522_v20  ;;  %v1586_v13 = vld [vmem:[#allocation4 + $0x1fc] ss:$12 sps:$4 sm:$0xff]   ;;  %v1584_v14 = vld [vmem:[#allocation4 + $0x1f8] ss:$12 sps:$4 sm:$0xff]   ;;  %v1587_v15 = vld [vmem:[#allocation4 + $0x200] ss:$12 sps:$4 sm:$0xff]  }
  0x3e   :  { %311 = vmatprep.subr.bf16.mxu1 %v1524_v22  ;;  %v1590_v16 = vld [vmem:[#allocation4 + $0x214] ss:$12 sps:$4 sm:$0xff]   ;;  %v1588_v17 = vld [vmem:[#allocation4 + $0x210] ss:$12 sps:$4 sm:$0xff]   ;;  %v1594_v19 = vld [vmem:[#allocation4 + $0x22c] ss:$12 sps:$4 sm:$0xff]  }
  0x3f   :  { %v1592_v20 = vld [vmem:[#allocation4 + $0x228] ss:$12 sps:$4 sm:$0xff]   ;;  %v1598_v22 = vld [vmem:[#allocation4 + $0x244] ss:$12 sps:$4 sm:$0xff]   ;;  %vm1225_vm2 = vcmask 31744  }
  0x40   :  { %1418 = vmatpush3.bf16.msra.mxu0 %v1519_v18  ;;  %v1591_v18 = vld [vmem:[#allocation4 + $0x218] ss:$12 sps:$4 sm:$0xff]  }
  0x41   :  { %1419 = vmatprep.subr.bf16.mxu0 %v1712_v0  ;;  %312 = vmatpush1.bf16.msra.mxu1 %v1526_v23  ;;  %v1596_v23 = vld [vmem:[#allocation4 + $0x240] ss:$12 sps:$4 sm:$0xff]  }
  0x42   :  { %313 = vmatprep.subr.bf16.mxu1 %v1528_v25  ;;  %v1602_v25 = vld [vmem:[#allocation4 + $0x25c] ss:$12 sps:$4 sm:$0xff]  }
  0x44   :  { %1420 = vmatpush3.bf16.msra.mxu0 %v1523_v21  ;;  %v1595_v21 = vld [vmem:[#allocation4 + $0x230] ss:$12 sps:$4 sm:$0xff]  }
  0x45   :  { %1421 = vmatprep.subr.bf16.mxu0 %v1712_v0  ;;  %314 = vmatpush1.bf16.msra.mxu1 %v1530_v26  ;;  %v1600_v26 = vld [vmem:[#allocation4 + $0x258] ss:$12 sps:$4 sm:$0xff]  }
  0x46   :  { %562 = vmatprep.subr.bf16.mxu1 %v1534_v28  ;;  %v1606_v28 = vld [vmem:[#allocation4 + $0x274] ss:$12 sps:$4 sm:$0xff]  }
  0x48   :  { %1422 = vmatpush3.bf16.msra.mxu0 %v1527_v24  ;;  %v1599_v24 = vld [vmem:[#allocation4 + $0x248] ss:$12 sps:$4 sm:$0xff]  }
  0x49   :  { %1423 = vmatprep.subr.bf16.mxu0 %v1712_v0 }
  0x4c   :  { %1424 = vmatpush3.bf16.msra.mxu0 %v1531_v27  ;;  %v1603_v27 = vld [vmem:[#allocation4 + $0x260] ss:$12 sps:$4 sm:$0xff]  }
  0x4d   :  { %1429 = vmatprep.subr.bf16.mxu0 %v1712_v0 }
 0x102   :  { %v114_v31 = vpop.f32.mrb[0].mxu0 }
 0x103   :  { %v115_v32 = vadd.f32 %v1256_v30, %v114_v31  ;;  %v1407_v33 = vpop.f32.mrb[1].mxu0  ;;  %v1604_v30 = vld [vmem:[#allocation4 + $0x270] ss:$12 sps:$4 sm:$0xff]   ;;  %v1607_v31 = vld [vmem:[#allocation4 + $0x278] ss:$12 sps:$4 sm:$0xff]  }
 0x104   :  { %v117_v34 = vpop.f32.mrb[2].mxu0  ;;  %v1608_v33 = vld [vmem:[#allocation4 + $0x288] ss:$12 sps:$4 sm:$0xff]  }
 0x105   :  { %1628 = vtanh.f32 %v115_v32  ;;  %v1408_v35 = vpop.f32.mrb[3].mxu0  ;;  %v1610_v32 = vld [vmem:[#allocation4 + $0x28c] ss:$12 sps:$4 sm:$0xff]   ;;  %v1611_v34 = vld [vmem:[#allocation4 + $0x290] ss:$12 sps:$4 sm:$0xff]  }
 0x106   :  { %v1614_v35 = vld [vmem:[#allocation4 + $0x2a4] ss:$12 sps:$4 sm:$0xff]  }
 0x10f   :  { %v1629_v36 = vpop.eup %1628 }
 0x110   :  { %v1801_v39 = vpack.c.bf16 %v1629_v36, %v1629_v36  ;;  %v1615_v36 = vld [vmem:[#allocation4 + $0x2a8] ss:$12 sps:$4 sm:$0xff]  }
 0x112   :  { %332 = vmatmul.mubr.bf16.vlgmr.msra.gmra.mrb[0].mxu1 %v1801_v39  ;;  %1426 = vmatmul.mubr.bf16.vlgmr.msra.gmra.mrb[4].mxu0 %v1801_v39 }
 0x113   :  { %563 = vmatpush1.bf16.msra.mxu1 %v1532_v37  ;;  %1430 = vmatpush3.bf16.msra.mxu0 %v1535_v38  ;;  %v1618_v37 = vld [vmem:[#allocation4 + $0x2bc] ss:$12 sps:$4 sm:$0xff]   ;;  %v1616_v38 = vld [vmem:[#allocation4 + $0x2b8] ss:$12 sps:$4 sm:$0xff]  }
 0x114   :  { %564 = vmatprep.subr.bf16.mxu1 %v1538_v40  ;;  %1431 = vmatprep.subr.bf16.mxu0 %v1712_v0  ;;  %v1619_v40 = vld [vmem:[#allocation4 + $0x2c0] ss:$12 sps:$4 sm:$0xff]  }
 0x115   :  { %594 = vmatprep.mubr.bf16.mxu1 %v1714_v29  ;;  %1445 = vmatprep.mubr.msk.bf16.mxu0 %vm1713_vm0, %v1712_v0 }
 0x117   :  { %565 = vmatpush1.bf16.msra.mxu1 %v1536_v41  ;;  %1432 = vmatpush3.bf16.msra.mxu0 %v1539_v42  ;;  %v1622_v41 = vld [vmem:[#allocation4 + $0x2d4] ss:$12 sps:$4 sm:$0xff]   ;;  %v1620_v42 = vld [vmem:[#allocation4 + $0x2d0] ss:$12 sps:$4 sm:$0xff]  }
 0x118   :  { %566 = vmatprep.subr.bf16.mxu1 %v1542_v43  ;;  %1433 = vmatprep.subr.bf16.mxu0 %v1712_v0  ;;  %v1623_v43 = vld [vmem:[#allocation4 + $0x2d8] ss:$12 sps:$4 sm:$0xff]  }
 0x11b   :  { %567 = vmatpush1.bf16.msra.mxu1 %v1540_v44  ;;  %1434 = vmatpush3.bf16.msra.mxu0 %v1543_v45  ;;  %v1626_v44 = vld [vmem:[#allocation4 + $0x2ec] ss:$12 sps:$4 sm:$0xff]   ;;  %v1624_v45 = vld [vmem:[#allocation4 + $0x2e8] ss:$12 sps:$4 sm:$0xff]  }
 0x11c   :  { %568 = vmatprep.subr.bf16.mxu1 %v1546_v46  ;;  %1435 = vmatprep.subr.bf16.mxu0 %v1712_v0  ;;  %v1627_v46 = vld [vmem:[#allocation4 + $0x2f0] ss:$12 sps:$4 sm:$0xff]  }
 0x11f   :  { %569 = vmatpush1.bf16.msra.mxu1 %v1544_v47  ;;  %1436 = vmatpush3.bf16.msra.mxu0 %v1547_v48 }
 0x120   :  { %570 = vmatprep.subr.bf16.mxu1 %v1550_v49  ;;  %1437 = vmatprep.subr.bf16.mxu0 %v1712_v0 }
 0x123   :  { %571 = vmatpush1.bf16.msra.mxu1 %v1548_v50  ;;  %1438 = vmatpush3.bf16.msra.mxu0 %v1551_v51 }
 0x124   :  { %572 = vmatprep.subr.bf16.mxu1 %v1554_v52  ;;  %1439 = vmatprep.subr.bf16.mxu0 %v1712_v0 }
 0x127   :  { %573 = vmatpush1.bf16.msra.mxu1 %v1552_v53  ;;  %1440 = vmatpush3.bf16.msra.mxu0 %v1555_v54 }
 0x128   :  { %574 = vmatprep.subr.bf16.mxu1 %v1558_v55  ;;  %1441 = vmatprep.subr.bf16.mxu0 %v1712_v0  ;;  %v156_v55 = vlaneseq }
 0x12b   :  { %575 = vmatpush1.bf16.msra.mxu1 %v1556_v56  ;;  %1442 = vmatpush3.bf16.msra.mxu0 %v1559_v57  ;;  %v157_v56 = vshrl.u32 %v156_v55, 7 }
 0x12c   :  { %576 = vmatprep.subr.bf16.mxu1 %v1562_v58  ;;  %1443 = vmatprep.subr.bf16.mxu0 %v1712_v0 }
 0x12d   :  { %v1843_v57 = vsub.s32 1, %v157_v56 }
 0x12f   :  { %577 = vmatpush1.bf16.msra.mxu1 %v1560_v59  ;;  %1444 = vmatpush3.bf16.msra.mxu0 %v1563_v60  ;;  %v1849_v59 = vsub.s32 2, %v157_v56 }
 0x130   :  { %839 = vmatprep.subr.bf16.mxu1 %v1566_v61  ;;  %1449 = vmatprep.subr.bf16.mxu0 %v1712_v0 }
 0x132   :  { %595 = vmatmul.mubr.bf16.vlgmr.msra.gmra.mrb[4].mxu1 %v1801_v39  ;;  %1446 = vmatmul.mubr.bf16.vlgmr.msra.gmra.mrb[8].mxu0 %v1801_v39 }
 0x133   :  { %840 = vmatpush1.bf16.msra.mxu1 %v1564_v62  ;;  %1450 = vmatpush3.bf16.msra.mxu0 %v1567_v63 }
 0x134   :  { %841 = vmatprep.subr.bf16.mxu1 %v1570_v1  ;;  %1451 = vmatprep.subr.bf16.mxu0 %v1712_v0 }
 0x135   :  { %871 = vmatprep.mubr.bf16.mxu1 %v1714_v29  ;;  %1465 = vmatprep.mubr.msk.bf16.mxu0 %vm1713_vm0, %v1712_v0 }
 0x137   :  { %842 = vmatpush1.bf16.msra.mxu1 %v1568_v2  ;;  %1452 = vmatpush3.bf16.msra.mxu0 %v1571_v3 }
 0x138   :  { %843 = vmatprep.subr.bf16.mxu1 %v1574_v4  ;;  %1453 = vmatprep.subr.bf16.mxu0 %v1712_v0 }
 0x13b   :  { %844 = vmatpush1.bf16.msra.mxu1 %v1572_v5  ;;  %1454 = vmatpush3.bf16.msra.mxu0 %v1575_v6 }
 0x13c   :  { %845 = vmatprep.subr.bf16.mxu1 %v1578_v7  ;;  %1455 = vmatprep.subr.bf16.mxu0 %v1712_v0 }
 0x13f   :  { %846 = vmatpush1.bf16.msra.mxu1 %v1576_v8  ;;  %1456 = vmatpush3.bf16.msra.mxu0 %v1579_v9 }
 0x140   :  { %847 = vmatprep.subr.bf16.mxu1 %v1582_v10  ;;  %1457 = vmatprep.subr.bf16.mxu0 %v1712_v0 }
 0x143   :  { %848 = vmatpush1.bf16.msra.mxu1 %v1580_v11  ;;  %1458 = vmatpush3.bf16.msra.mxu0 %v1583_v12 }
 0x144   :  { %849 = vmatprep.subr.bf16.mxu1 %v1586_v13  ;;  %1459 = vmatprep.subr.bf16.mxu0 %v1712_v0 }
 0x147   :  { %850 = vmatpush1.bf16.msra.mxu1 %v1584_v14  ;;  %1460 = vmatpush3.bf16.msra.mxu0 %v1587_v15 }
 0x148   :  { %851 = vmatprep.subr.bf16.mxu1 %v1590_v16  ;;  %1461 = vmatprep.subr.bf16.mxu0 %v1712_v0 }
 0x14b   :  { %852 = vmatpush1.bf16.msra.mxu1 %v1588_v17  ;;  %1462 = vmatpush3.bf16.msra.mxu0 %v1591_v18 }
 0x14c   :  { %853 = vmatprep.subr.bf16.mxu1 %v1594_v19  ;;  %1463 = vmatprep.subr.bf16.mxu0 %v1712_v0 }
 0x14f   :  { %854 = vmatpush1.bf16.msra.mxu1 %v1592_v20  ;;  %1464 = vmatpush3.bf16.msra.mxu0 %v1595_v21  ;;  %v1865_v21 = vsub.s32 0, %v157_v56 }
 0x150   :  { %1117 = vmatprep.subr.bf16.mxu1 %v1598_v22  ;;  %1469 = vmatprep.subr.bf16.mxu0 %v1712_v0 }
 0x152   :  { %872 = vmatmul.mubr.bf16.vlgmr.msra.gmra.mrb[8].mxu1 %v1801_v39  ;;  %1466 = vmatmul.mubr.bf16.vlgmr.msra.gmra.mrb[12].mxu0 %v1801_v39 }
 0x153   :  { %1118 = vmatpush1.bf16.msra.mxu1 %v1596_v23  ;;  %1470 = vmatpush3.bf16.msra.mxu0 %v1599_v24 }
 0x154   :  { %1119 = vmatprep.subr.bf16.mxu1 %v1602_v25  ;;  %1471 = vmatprep.subr.bf16.mxu0 %v1712_v0 }
 0x155   :  { %1149 = vmatprep.mubr.bf16.mxu1 %v1714_v29  ;;  %1485 = vmatprep.mubr.msk.bf16.mxu0 %vm1713_vm0, %v1712_v0  ;;  %v1612_v29 = vld [vmem:[#allocation4 + $0x2a0] ss:$12 sps:$4 sm:$0xff]  }
 0x157   :  { %1120 = vmatpush1.bf16.msra.mxu1 %v1600_v26  ;;  %1472 = vmatpush3.bf16.msra.mxu0 %v1603_v27 }
 0x158   :  { %1121 = vmatprep.subr.bf16.mxu1 %v1606_v28  ;;  %1473 = vmatprep.subr.bf16.mxu0 %v1712_v0 }
 0x15b   :  { %1122 = vmatpush1.bf16.msra.mxu1 %v1604_v30  ;;  %1474 = vmatpush3.bf16.msra.mxu0 %v1607_v31 }
 0x15c   :  { %1123 = vmatprep.subr.bf16.mxu1 %v1610_v32  ;;  %1475 = vmatprep.subr.bf16.mxu0 %v1712_v0 }
 0x15f   :  { %1124 = vmatpush1.bf16.msra.mxu1 %v1608_v33  ;;  %1476 = vmatpush3.bf16.msra.mxu0 %v1611_v34 }
 0x160   :  { %1125 = vmatprep.subr.bf16.mxu1 %v1614_v35  ;;  %1477 = vmatprep.subr.bf16.mxu0 %v1712_v0 }
 0x163   :  { %1126 = vmatpush1.bf16.msra.mxu1 %v1612_v29  ;;  %1478 = vmatpush3.bf16.msra.mxu0 %v1615_v36 }
 0x164   :  { %1127 = vmatprep.subr.bf16.mxu1 %v1618_v37  ;;  %1479 = vmatprep.subr.bf16.mxu0 %v1712_v0  ;;  %v1309_v37 = vld [vmem:[%s1910_s4 + $0x6] sm:$0x7] }
 0x167   :  { %1128 = vmatpush1.bf16.msra.mxu1 %v1616_v38  ;;  %1480 = vmatpush3.bf16.msra.mxu0 %v1619_v40  ;;  %v707_v38 = vrot.slane %v1309_v37, %v1849_v59  ;;  %v703_v40 = vrot.slane %v1309_v37, %v1843_v57 }
 0x168   :  { %1129 = vmatprep.subr.bf16.mxu1 %v1622_v41  ;;  %1481 = vmatprep.subr.bf16.mxu0 %v1712_v0 }
 0x16b   :  { %1130 = vmatpush1.bf16.msra.mxu1 %v1620_v42  ;;  %1482 = vmatpush3.bf16.msra.mxu0 %v1623_v43 }
 0x16c   :  { %1131 = vmatprep.subr.bf16.mxu1 %v1626_v44  ;;  %1483 = vmatprep.subr.bf16.mxu0 %v1712_v0  ;;  %v154_v0 = vld [vmem:[%s1910_s4] sm:$0x7] }
 0x16d   :  { %v163_v58 = vrot.slane %v154_v0, %v1843_v57  ;;  %v167_v61 = vrot.slane %v154_v0, %v1849_v59  ;;  %v159_v22 = vrot.slane %v154_v0, %v1865_v21 }
 0x16f   :  { %1132 = vmatpush1.bf16.msra.mxu1 %v1624_v45  ;;  %1484 = vmatpush3.bf16.msra.mxu0 %v1627_v46 }
 0x172   :  { %1150 = vmatmul.mubr.bf16.vlgmr.msra.gmra.mrb[12].mxu1 %v1801_v39  ;;  %1486 = vmatmul.mubr.bf16.vlgmr.msra.gmra.mrb[16].mxu0 %v1801_v39  ;;  %v1284_v39 = vld [vmem:[%s1910_s4 + $0x3] sm:$0x7] }
 0x173   :  { %v430_v62 = vrot.slane %v1284_v39, %v1849_v59  ;;  %v426_v63 = vrot.slane %v1284_v39, %v1843_v57  ;;  %v422_v23 = vrot.slane %v1284_v39, %v1865_v21 }
 0x1e5   :  { %v333_v47 = vpop.f32.mrb[0].mxu1  ;;  %v374_v48 = vpop.f32.mrb[4].mxu0 }
 0x1e6   :  { %v335_v49 = vpop.f32.mrb[1].mxu1  ;;  %v1427_v50 = vpop.f32.mrb[5].mxu0  ;;  %v1857_v4 = vadd.f32 %v374_v48, %v167_v61  ;;  %v334_v26 = vadd.f32 %v333_v47, %v159_v22 }
 0x1e7   :  { %v337_v51 = vpop.f32.mrb[2].mxu1  ;;  %v377_v52 = vpop.f32.mrb[6].mxu0  ;;  %v336_v60 = vadd.f32 %v335_v49, %v163_v58  ;;  %v699_v58 = vrot.slane %v1309_v37, %v1865_v21 }
 0x1e8   :  { %v338_v53 = vpop.f32.mrb[3].mxu1  ;;  %v1428_v54 = vpop.f32.mrb[7].mxu0 }
 0x1e9   :  { %v380_v1 = vmul.f32 0.5, %v336_v60 }
 0x1eb   :  { %v381_v11 = vmul.f32 1.442695, %v380_v1 }
 0x1ed   :  { %1630 = vpow2.f32 %v381_v11 }
 0x1f7   :  { %v1631_v24 = vpop.eup %1630 }
 0x205   :  { %v596_v2 = vpop.f32.mrb[4].mxu1  ;;  %v637_v3 = vpop.f32.mrb[8].mxu0 }
 0x206   :  { %v1859_v5 = vadd.f32 %v637_v3, %v430_v62  ;;  %v598_v6 = vpop.f32.mrb[5].mxu1  ;;  %v1447_v7 = vpop.f32.mrb[9].mxu0  ;;  %v597_v28 = vadd.f32 %v596_v2, %v422_v23 }
 0x207   :  { %v599_v8 = vadd.f32 %v598_v6, %v426_v63  ;;  %v600_v9 = vpop.f32.mrb[6].mxu1  ;;  %v640_v10 = vpop.f32.mrb[10].mxu0 }
 0x208   :  { %v646_v12 = vmax.f32 %v1857_v4, %v1859_v5  ;;  %v601_v13 = vpop.f32.mrb[7].mxu1  ;;  %v1448_v14 = vpop.f32.mrb[11].mxu0  ;;  %v1334_v10 = vld [vmem:[%s1910_s4 + $0x9] sm:$0x7] }
 0x209   :  { %v643_v15 = vmul.f32 0.5, %v599_v8  ;;  %v985_v11 = vrot.slane %v1334_v10, %v1849_v59 }
 0x20a   :  { %v647_v16 = vsub.f32 %v1857_v4, %v646_v12  ;;  %v650_v17 = vsub.f32 %v1859_v5, %v646_v12 }
 0x20b   :  { %v644_v18 = vmul.f32 1.442695, %v643_v15 }
 0x20c   :  { %v648_v19 = vmul.f32 1.442695, %v647_v16  ;;  %v651_v20 = vmul.f32 1.442695, %v650_v17 }
 0x20d   :  { %1632 = vpow2.f32 %v644_v18 }
 0x20e   :  { %1634 = vpow2.f32 %v648_v19 }
 0x20f   :  { %1636 = vpow2.f32 %v651_v20 }
 0x217   :  { %v1633_v25 = vpop.eup %1632 }
 0x218   :  { %v1635_v27 = vpop.eup %1634 }
 0x219   :  { %v1637_v30 = vpop.eup %1636  ;;  %v654_v31 = vmul.f32 %v1635_v27, %v334_v26  ;;  %v657_v32 = vmul.f32 %v1635_v27, %v1631_v24 }
 0x21a   :  { %v653_v33 = vadd.f32 %v1637_v30, %v1635_v27  ;;  %v655_v34 = vmul.f32 %v1637_v30, %v597_v28  ;;  %v658_v35 = vmul.f32 %v1637_v30, %v1633_v25 }
 0x21c   :  { %v656_v29 = vadd.f32 %v655_v34, %v654_v31  ;;  %v659_v36 = vadd.f32 %v658_v35, %v657_v32 }
 0x225   :  { %v873_v41 = vpop.f32.mrb[8].mxu1  ;;  %v914_v42 = vpop.f32.mrb[12].mxu0 }
 0x226   :  { %v1874_v43 = vadd.f32 %v914_v42, %v707_v38  ;;  %v875_v44 = vpop.f32.mrb[9].mxu1  ;;  %v1467_v45 = vpop.f32.mrb[13].mxu0  ;;  %v874_v61 = vadd.f32 %v873_v41, %v699_v58 }
 0x227   :  { %v876_v46 = vadd.f32 %v875_v44, %v703_v40  ;;  %v877_v47 = vpop.f32.mrb[10].mxu1  ;;  %v917_v48 = vpop.f32.mrb[14].mxu0 }
 0x228   :  { %v923_v49 = vmax.f32 %v646_v12, %v1874_v43  ;;  %v878_v50 = vpop.f32.mrb[11].mxu1  ;;  %v1468_v51 = vpop.f32.mrb[15].mxu0 }
 0x229   :  { %v920_v52 = vmul.f32 0.5, %v876_v46 }
 0x22a   :  { %v924_v53 = vsub.f32 %v646_v12, %v923_v49  ;;  %v927_v54 = vsub.f32 %v1874_v43, %v923_v49  ;;  %v981_v12 = vrot.slane %v1334_v10, %v1843_v57 }
 0x22b   :  { %v921_v55 = vmul.f32 1.442695, %v920_v52 }
 0x22c   :  { %v925_v56 = vmul.f32 1.442695, %v924_v53  ;;  %v928_v0 = vmul.f32 1.442695, %v927_v54 }
 0x22d   :  { %1638 = vpow2.f32 %v921_v55 }
 0x22e   :  { %1640 = vpow2.f32 %v925_v56 }
 0x22f   :  { %1642 = vpow2.f32 %v928_v0 }
 0x237   :  { %v1639_v39 = vpop.eup %1638 }
 0x238   :  { %v1641_v60 = vpop.eup %1640 }
 0x239   :  { %v1643_v62 = vpop.eup %1642  ;;  %v930_v63 = vmul.f32 %v1641_v60, %v653_v33  ;;  %v932_v1 = vmul.f32 %v1641_v60, %v656_v29  ;;  %v935_v2 = vmul.f32 %v1641_v60, %v659_v36  ;;  %v977_v33 = vrot.slane %v1334_v10, %v1865_v21 }
 0x23a   :  { %v933_v3 = vmul.f32 %v1643_v62, %v874_v61  ;;  %v936_v6 = vmul.f32 %v1643_v62, %v1639_v39 }
 0x23b   :  { %v931_v7 = vadd.f32 %v1643_v62, %v930_v63 }
 0x23c   :  { %v934_v8 = vadd.f32 %v933_v3, %v932_v1  ;;  %v937_v9 = vadd.f32 %v936_v6, %v935_v2 }
 0x245   :  { %v1151_v13 = vpop.f32.mrb[12].mxu1  ;;  %v1192_v14 = vpop.f32.mrb[16].mxu0 }
 0x246   :  { %v1193_v15 = vadd.f32 %v1192_v14, %v985_v11  ;;  %v1153_v16 = vpop.f32.mrb[13].mxu1  ;;  %v1487_v17 = vpop.f32.mrb[17].mxu0  ;;  %v1152_v37 = vadd.f32 %v1151_v13, %v977_v33 }
 0x247   :  { %v1154_v18 = vadd.f32 %v1153_v16, %v981_v12  ;;  %v1155_v19 = vpop.f32.mrb[14].mxu1  ;;  %v1195_v20 = vpop.f32.mrb[18].mxu0 }
 0x248   :  { %v1201_v22 = vmax.f32 %v923_v49, %v1193_v15  ;;  %v1156_v23 = vpop.f32.mrb[15].mxu1  ;;  %v1488_v24 = vpop.f32.mrb[19].mxu0 }
 0x249   :  { %v1198_v25 = vmul.f32 0.5, %v1154_v18 }
 0x24a   :  { %v1202_v26 = vsub.f32 %v923_v49, %v1201_v22  ;;  %v1205_v27 = vsub.f32 %v1193_v15, %v1201_v22  ;;  %v1221_v28 = vsub.f32 %v1857_v4, %v1201_v22  ;;  %v1227_v59 = vsub.f32 %v1859_v5, %v1201_v22 }
 0x24b   :  { %v1233_v57 = vsub.f32 %v1874_v43, %v1201_v22  ;;  %v1199_v30 = vmul.f32 1.442695, %v1198_v25 }
 0x24c   :  { %v1203_v31 = vmul.f32 1.442695, %v1202_v26  ;;  %v1206_v32 = vmul.f32 1.442695, %v1205_v27  ;;  %v1222_v34 = vmul.f32 1.442695, %v1221_v28 }
 0x24d   :  { %1644 = vpow2.f32 %v1199_v30  ;;  %v1228_v29 = vmul.f32 1.442695, %v1227_v59  ;;  %v1234_v38 = vmul.f32 1.442695, %v1233_v57 }
 0x24e   :  { %1646 = vpow2.f32 %v1203_v31 }
 0x24f   :  { %1648 = vpow2.f32 %v1206_v32 }
 0x250   :  { %1650 = vpow2.f32 %v1222_v34 }
 0x251   :  { %1652 = vpow2.f32 %v1228_v29 }
 0x252   :  { %1654 = vpow2.f32 %v1234_v38 }
 0x257   :  { %v1645_v35 = vpop.eup %1644 }
 0x258   :  { %v1647_v36 = vpop.eup %1646 }
 0x259   :  { %v1649_v40 = vpop.eup %1648  ;;  %v1208_v4 = vmul.f32 %v1647_v36, %v931_v7  ;;  %v1210_v41 = vmul.f32 %v1647_v36, %v934_v8  ;;  %v1213_v5 = vmul.f32 %v1647_v36, %v937_v9 }
 0x25a   :  { %v1211_v42 = vmul.f32 %v1649_v40, %v1152_v37  ;;  %v1214_v43 = vmul.f32 %v1649_v40, %v1645_v35  ;;  %v1651_v21 = vpop.eup %1650 }
 0x25b   :  { %v1209_v44 = vadd.f32 %v1649_v40, %v1208_v4  ;;  %v1653_v47 = vpop.eup %1652 }
 0x25c   :  { %v1212_v45 = vadd.f32 %v1211_v42, %v1210_v41  ;;  %v1215_v46 = vadd.f32 %v1214_v43, %v1213_v5  ;;  %v1655_v48 = vpop.eup %1654 }
 0x25d   :  { %1656 = vrcp.f32 %v1209_v44 }
 0x267   :  { %v1657_v49 = vpop.eup %1656 }
 0x268   :  { %v1217_v50 = vmul.f32 %v1657_v49, %v1212_v45  ;;  %v1224_v51 = vmul.f32 %v1657_v49, %v1651_v21  ;;  %v1230_v52 = vmul.f32 %v1657_v49, %v1653_v47  ;;  %v1236_v53 = vmul.f32 %v1657_v49, %v1655_v48 }
 0x269   :  { %v1239_v54 = vmul.f32 %v1657_v49, %v1649_v40  ;;  %v1219_v55 = vmul.f32 %v1657_v49, %v1215_v46 }
 0x26a   :  { %1218 = vst [vmem:[%s1911_s5] sm:$0xff] %v1217_v50  ;;  %1226 = vst.msk [vmem:[%s1913_s7] sm:$0xff] %vm1225_vm2, %v1224_v51 }
 0x26b   :  { %1359 = vst.msk [vmem:[%s1913_s7 + $0x8] sm:$0xff] %vm1225_vm2, %v1230_v52  ;;  %1360 = vst.msk [vmem:[%s1913_s7 + $0x10] sm:$0xff] %vm1225_vm2, %v1236_v53 }
 0x26c   :  { %1361 = vst.msk [vmem:[%s1913_s7 + $0x18] sm:$0xff] %vm1225_vm2, %v1239_v54  ;;  %1220 = vst [vmem:[%s1912_s6] sm:$0xff] %v1219_v55 }
 0x26d   :  { %1254 = vsyncpa [#allocation3], 1 }
 0x26e   :  { %1255 = vsyncpa [#allocation5], 1 }

</bundles_post_ra>
